<compile_context>
chip_gen: v7x
topology: tpu7x:2x2x1
jax: 0.10.0
libtpu: 0.0.40
codegen_flags: <defaults>
</compile_context>

<pallas_src>
import functools
import math

import jax
import jax.numpy as jnp
import numpy as np
from jax.experimental import pallas as pl
from jax.experimental.pallas import tpu as pltpu

HIDDEN = 32


# ---------------------------------------------------------------------------
# Fused decoder kernel: normalize -> build pairs (via split weights) -> MLP.
# Runs once per graph (grid step).
# ---------------------------------------------------------------------------
def _decoder_kernel(funcs_ref, clss_ref, w1f_ref, w1t_ref, b1_ref, w2_ref,
                    b2_ref, o_ref, *, n_func, n_cls):
    f = funcs_ref[...]                                   # (Nf, H)
    c = clss_ref[...]                                    # (Nc, H)
    x = jnp.concatenate([f, c], axis=0)                  # (Nf+Nc, H), VMEM-resident

    # torch F.normalize(x, p=2, dim=1): x / max(||x||, 1e-12)
    sumsq = jnp.sum(x * x, axis=-1, keepdims=True)
    xn = x * jax.lax.rsqrt(jnp.maximum(sumsq, jnp.float32(1e-24)))

    # target node = last (normalized) function row; its contribution to the first
    # linear layer is a single (1, H) row added to every pair.
    target = xn[n_func - 1:n_func, :]                    # (1, H)
    tproj = jnp.dot(target, w1t_ref[...],
                    preferred_element_type=jnp.float32)  # (1, H)

    # One batched MXU matmul over all functions + classes rows.
    h = jnp.dot(xn, w1f_ref[...],
                preferred_element_type=jnp.float32) + tproj + b1_ref[...]
    h = jnp.maximum(h, 0.0)                              # ReLU

    s = jnp.dot(h, w2_ref[...],
                preferred_element_type=jnp.float32) + b2_ref[0, 0]  # (Nf+Nc, 1)

    # Output rows = functions[:-1] followed by all classes (drop the target row).
    o_ref[0:n_func - 1, :] = s[0:n_func - 1, :]
    o_ref[n_func - 1:n_func - 1 + n_cls, :] = s[n_func:n_func + n_cls, :]


def he_link_decoder(funcs, clss, w1, b1, w2, b2):
    """funcs: (G, Nf, H), clss: (G, Nc, H); w1: (2H, H), b1: (1, H), w2: (H, 1), b2: (1, 1)."""
    G, Nf, H = funcs.shape
    _, Nc, _ = clss.shape
    n_rows = (Nf - 1) + Nc

    w1f = w1[:H, :]    # applied to the node-feature half of the pair
    w1t = w1[H:, :]    # applied to the (shared) target half of the pair

    kernel = functools.partial(_decoder_kernel, n_func=Nf, n_cls=Nc)

    return pl.pallas_call(
        kernel,
        grid=(G,),
        out_shape=jax.ShapeDtypeStruct((G, n_rows, 1), jnp.float32),
        in_specs=[
            pl.BlockSpec((None, Nf, H), lambda g: (g, 0, 0)),   # functions (per graph)
            pl.BlockSpec((None, Nc, H), lambda g: (g, 0, 0)),   # classes   (per graph)
            pl.BlockSpec((H, H), lambda g: (0, 0)),             # W1 (node half)
            pl.BlockSpec((H, H), lambda g: (0, 0)),             # W1 (target half)
            pl.BlockSpec((1, H), lambda g: (0, 0)),             # b1
            pl.BlockSpec((H, 1), lambda g: (0, 0)),             # W2
            pl.BlockSpec(memory_space=pltpu.MemorySpace.SMEM),  # b2 scalar in SMEM
        ],
        out_specs=pl.BlockSpec((None, n_rows, 1), lambda g: (g, 0, 0)),
        compiler_params=pltpu.CompilerParams(
            dimension_semantics=("parallel",),                  # 2 TCs on v7x
        ),
    )(funcs, clss, w1f, w1t, b1, w2, b2)


# ---------------------------------------------------------------------------
# float64 numpy reference mirroring the PyTorch forward exactly.
# ---------------------------------------------------------------------------
def _reference(funcs, clss, w1, b1, w2, b2):
    funcs = np.asarray(funcs, np.float64)
    clss = np.asarray(clss, np.float64)
    w1 = np.asarray(w1, np.float64)
    b1 = np.asarray(b1, np.float64)
    w2 = np.asarray(w2, np.float64)
    b2 = np.asarray(b2, np.float64)

    def l2norm(x):
        n = np.linalg.norm(x, axis=1, keepdims=True)
        return x / np.maximum(n, 1e-12)

    outs = []
    for g in range(funcs.shape[0]):
        fn = l2norm(funcs[g])
        cn = l2norm(clss[g])
        t = fn[-1]
        out_f = np.concatenate([fn[:-1], np.tile(t[None, :], (fn.shape[0] - 1, 1))], axis=1)
        out_c = np.concatenate([cn, np.tile(t[None, :], (cn.shape[0], 1))], axis=1)
        out = np.concatenate([out_f, out_c], axis=0)
        h = np.maximum(out @ w1 + b1, 0.0)
        outs.append(h @ w2 + b2)
    return np.stack(outs, axis=0)


if __name__ == "__main__":
    key = jax.random.PRNGKey(0)
    kf, kc, k1, kb1, k2, kb2 = jax.random.split(key, 6)

    G, NF, NC, H = 2, 16, 8, HIDDEN

    funcs = jax.random.normal(kf, (G, NF, H), jnp.float32)
    clss = jax.random.normal(kc, (G, NC, H), jnp.float32)

    w1 = jax.random.normal(k1, (2 * H, H), jnp.float32) / math.sqrt(2.0 * H)
    b1 = 0.01 * jax.random.normal(kb1, (1, H), jnp.float32)
    w2 = jax.random.normal(k2, (H, 1), jnp.float32) / math.sqrt(float(H))
    b2 = 0.01 * jax.random.normal(kb2, (1, 1), jnp.float32)

    scores = he_link_decoder(funcs, clss, w1, b1, w2, b2)
    jax.block_until_ready(scores)

    n_rows = (NF - 1) + NC
    assert scores.shape == (G, n_rows, 1)
    assert jnp.all(jnp.isfinite(scores))

    ref = _reference(funcs, clss, w1, b1, w2, b2)
    np.testing.assert_allclose(np.asarray(scores), ref, rtol=1e-4, atol=1e-4)

    print("KERNEL_OK")
</pallas_src>

<mosaic_0001>
module attributes {stable_mosaic.version = 11 : i64} {
  func.func @_decoder_kernel(%arg0: i32, %arg1: memref<1x16x32xf32, #tpu.memory_space<vmem>>, %arg2: memref<1x8x32xf32, #tpu.memory_space<vmem>>, %arg3: memref<32x32xf32, #tpu.memory_space<vmem>>, %arg4: memref<32x32xf32, #tpu.memory_space<vmem>>, %arg5: memref<1x32xf32, #tpu.memory_space<vmem>>, %arg6: memref<32x1xf32, #tpu.memory_space<vmem>>, %arg7: memref<1x1xf32, #tpu.memory_space<smem>>, %arg8: memref<1x23x1xf32, #tpu.memory_space<vmem>>) attributes {dimension_semantics = [#tpu.dimension_semantics<parallel>], iteration_bounds = array<i64: 2>, scalar_prefetch = 0 : i64, scratch_operands = 0 : i64, tpu.core_type = #tpu.core_type<tc>, window_params = [{transform_indices = @transform_0, window_bounds = array<i64: 1, 16, 32>}, {transform_indices = @transform_1, window_bounds = array<i64: 1, 8, 32>}, {pipeline_mode = #tpu.pipeline_mode<synchronous>, transform_indices = @transform_2, window_bounds = array<i64: 32, 32>}, {pipeline_mode = #tpu.pipeline_mode<synchronous>, transform_indices = @transform_3, window_bounds = array<i64: 32, 32>}, {pipeline_mode = #tpu.pipeline_mode<synchronous>, transform_indices = @transform_4, window_bounds = array<i64: 1, 32>}, {pipeline_mode = #tpu.pipeline_mode<synchronous>, transform_indices = @transform_5, window_bounds = array<i64: 32, 1>}, {transform_indices = @transform_6, window_bounds = array<i64: 1, 1>}, {transform_indices = @transform_7, window_bounds = array<i64: 1, 23, 1>}]} {
    %c0 = arith.constant 0 : index
    %c0_0 = arith.constant 0 : index
    %c0_1 = arith.constant 0 : index
    %0 = vector.load %arg1[%c0, %c0_0, %c0_1] : memref<1x16x32xf32, #tpu.memory_space<vmem>>, vector<1x16x32xf32>
    %1 = vector.shape_cast %0 : vector<1x16x32xf32> to vector<16x32xf32>
    %c0_2 = arith.constant 0 : index
    %c0_3 = arith.constant 0 : index
    %c0_4 = arith.constant 0 : index
    %2 = vector.load %arg2[%c0_2, %c0_3, %c0_4] : memref<1x8x32xf32, #tpu.memory_space<vmem>>, vector<1x8x32xf32>
    %3 = vector.shape_cast %2 : vector<1x8x32xf32> to vector<8x32xf32>
    %4 = tpu.concatenate %1, %3 in 0 : vector<16x32xf32>, vector<8x32xf32> -> vector<24x32xf32>
    %5 = arith.mulf %4, %4 : vector<24x32xf32>
    %cst = arith.constant dense<0.000000e+00> : vector<24xf32>
    %6 = vector.multi_reduction <add>, %5, %cst [1] : vector<24x32xf32> to vector<24xf32>
    %7 = vector.shape_cast %6 : vector<24xf32> to vector<24x1xf32>
    %cst_5 = arith.constant 1.000000e-24 : f32
    %8 = vector.broadcast %cst_5 : f32 to vector<24x1xf32>
    %9 = arith.maximumf %7, %8 : vector<24x1xf32>
    %10 = math.rsqrt %9 : vector<24x1xf32>
    %11 = vector.broadcast %10 : vector<24x1xf32> to vector<24x32xf32>
    %12 = arith.mulf %4, %11 : vector<24x32xf32>
    %13 = vector.extract_strided_slice %12 {offsets = [15, 0], sizes = [1, 32], strides = [1, 1]} : vector<24x32xf32> to vector<1x32xf32>
    %c0_6 = arith.constant 0 : index
    %c0_7 = arith.constant 0 : index
    %14 = vector.load %arg4[%c0_6, %c0_7] : memref<32x32xf32, #tpu.memory_space<vmem>>, vector<32x32xf32>
    %cst_8 = arith.constant dense<0.000000e+00> : vector<1x32xf32>
    %15 = tpu.matmul %13, %14, %cst_8 {dimension_numbers = #tpu.dot_dimension_numbers<[1], [0], [0], [1], [0, 0, 1, 1], [], []>} : vector<1x32xf32>, vector<32x32xf32>, vector<1x32xf32> -> vector<1x32xf32>
    %c0_9 = arith.constant 0 : index
    %c0_10 = arith.constant 0 : index
    %16 = vector.load %arg3[%c0_9, %c0_10] : memref<32x32xf32, #tpu.memory_space<vmem>>, vector<32x32xf32>
    %cst_11 = arith.constant dense<0.000000e+00> : vector<24x32xf32>
    %17 = tpu.matmul %12, %16, %cst_11 {dimension_numbers = #tpu.dot_dimension_numbers<[1], [0], [0], [1], [0, 0, 1, 1], [], []>} : vector<24x32xf32>, vector<32x32xf32>, vector<24x32xf32> -> vector<24x32xf32>
    %18 = vector.broadcast %15 : vector<1x32xf32> to vector<24x32xf32>
    %19 = arith.addf %17, %18 : vector<24x32xf32>
    %c0_12 = arith.constant 0 : index
    %c0_13 = arith.constant 0 : index
    %20 = vector.load %arg5[%c0_12, %c0_13] : memref<1x32xf32, #tpu.memory_space<vmem>>, vector<1x32xf32>
    %21 = vector.broadcast %20 : vector<1x32xf32> to vector<24x32xf32>
    %22 = arith.addf %19, %21 : vector<24x32xf32>
    %cst_14 = arith.constant 0.000000e+00 : f32
    %23 = vector.broadcast %cst_14 : f32 to vector<24x32xf32>
    %24 = arith.maximumf %22, %23 : vector<24x32xf32>
    %c0_15 = arith.constant 0 : index
    %c0_16 = arith.constant 0 : index
    %25 = vector.load %arg6[%c0_15, %c0_16] : memref<32x1xf32, #tpu.memory_space<vmem>>, vector<32x1xf32>
    %cst_17 = arith.constant dense<0.000000e+00> : vector<24x1xf32>
    %26 = tpu.matmul %24, %25, %cst_17 {dimension_numbers = #tpu.dot_dimension_numbers<[1], [0], [0], [1], [0, 0, 1, 1], [], []>} : vector<24x32xf32>, vector<32x1xf32>, vector<24x1xf32> -> vector<24x1xf32>
    %c0_18 = arith.constant 0 : index
    %c0_19 = arith.constant 0 : index
    %27 = memref.load %arg7[%c0_18, %c0_19] : memref<1x1xf32, #tpu.memory_space<smem>>
    %28 = vector.broadcast %27 : f32 to vector<24x1xf32>
    %29 = arith.addf %26, %28 : vector<24x1xf32>
    %30 = vector.extract_strided_slice %29 {offsets = [0, 0], sizes = [15, 1], strides = [1, 1]} : vector<24x1xf32> to vector<15x1xf32>
    %c0_20 = arith.constant 0 : index
    %c0_21 = arith.constant 0 : index
    %c0_22 = arith.constant 0 : index
    %31 = vector.load %arg8[%c0_20, %c0_21, %c0_22] : memref<1x23x1xf32, #tpu.memory_space<vmem>>, vector<1x15x1xf32>
    %32 = vector.shape_cast %31 : vector<1x15x1xf32> to vector<15x1xf32>
    %33 = vector.shape_cast %30 : vector<15x1xf32> to vector<1x15x1xf32>
    tpu.vector_store %arg8[%c0_20, %c0_21, %c0_22], %33 {strides = array<i32>} : memref<1x23x1xf32, #tpu.memory_space<vmem>>, vector<1x15x1xf32>,
    %34 = vector.extract_strided_slice %29 {offsets = [16, 0], sizes = [8, 1], strides = [1, 1]} : vector<24x1xf32> to vector<8x1xf32>
    %c0_23 = arith.constant 0 : index
    %c15 = arith.constant 15 : index
    %c0_24 = arith.constant 0 : index
    %35 = vector.load %arg8[%c0_23, %c15, %c0_24] : memref<1x23x1xf32, #tpu.memory_space<vmem>>, vector<1x8x1xf32>
    %36 = vector.shape_cast %35 : vector<1x8x1xf32> to vector<8x1xf32>
    %37 = vector.shape_cast %34 : vector<8x1xf32> to vector<1x8x1xf32>
    tpu.vector_store %arg8[%c0_23, %c15, %c0_24], %37 {strides = array<i32>} : memref<1x23x1xf32, #tpu.memory_space<vmem>>, vector<1x8x1xf32>,
    return
  }
  func.func @transform_0(%arg0: i32) -> (i32, i32, i32) {
    %c0_i32 = arith.constant 0 : i32
    %c0_i32_0 = arith.constant 0 : i32
    %c0_i32_1 = arith.constant 0 : i32
    return %arg0, %c0_i32, %c0_i32_0 : i32, i32, i32
  }
  func.func @transform_1(%arg0: i32) -> (i32, i32, i32) {
    %c0_i32 = arith.constant 0 : i32
    %c0_i32_0 = arith.constant 0 : i32
    %c0_i32_1 = arith.constant 0 : i32
    return %arg0, %c0_i32, %c0_i32_0 : i32, i32, i32
  }
  func.func @transform_2(%arg0: i32) -> (i32, i32) {
    %c0_i32 = arith.constant 0 : i32
    %c0_i32_0 = arith.constant 0 : i32
    %c0_i32_1 = arith.constant 0 : i32
    return %c0_i32, %c0_i32_0 : i32, i32
  }
  func.func @transform_3(%arg0: i32) -> (i32, i32) {
    %c0_i32 = arith.constant 0 : i32
    %c0_i32_0 = arith.constant 0 : i32
    %c0_i32_1 = arith.constant 0 : i32
    return %c0_i32, %c0_i32_0 : i32, i32
  }
  func.func @transform_4(%arg0: i32) -> (i32, i32) {
    %c0_i32 = arith.constant 0 : i32
    %c0_i32_0 = arith.constant 0 : i32
    %c0_i32_1 = arith.constant 0 : i32
    return %c0_i32, %c0_i32_0 : i32, i32
  }
  func.func @transform_5(%arg0: i32) -> (i32, i32) {
    %c0_i32 = arith.constant 0 : i32
    %c0_i32_0 = arith.constant 0 : i32
    %c0_i32_1 = arith.constant 0 : i32
    return %c0_i32, %c0_i32_0 : i32, i32
  }
  func.func @transform_6(%arg0: i32) -> (i32, i32) {
    %c0_i32 = arith.constant 0 : i32
    %c0_i32_0 = arith.constant 0 : i32
    %c0_i32_1 = arith.constant 0 : i32
    return %c0_i32, %c0_i32_0 : i32, i32
  }
  func.func @transform_7(%arg0: i32) -> (i32, i32, i32) {
    %c0_i32 = arith.constant 0 : i32
    %c0_i32_0 = arith.constant 0 : i32
    %c0_i32_1 = arith.constant 0 : i32
    return %arg0, %c0_i32, %c0_i32_0 : i32, i32, i32
  }
}

</mosaic_0001>

<bundles_post_ra>
// kernel: tpu_custom_call.1
= control target key start
LH: loop header
LB: loop body
LE: loop exit
PB: predicated region body
PF: predicated region fallthrough
CT: control target
= control target key end

     0   :  { %s1334_s0 = inlined_call_operand.vmem [shape: f32[2,16,32], index: 0, kind: input, shape index: {}]   ;;  %s1335_s1 = inlined_call_operand.hbm [shape: f32[2,8,32], index: 1, kind: input, shape index: {}]   ;;  %s1336_s2 = inlined_call_operand.hbm [shape: f32[32,32], index: 2, kind: input, shape index: {}]   ;;  %s1337_s3 = inlined_call_operand.hbm [shape: f32[32,32], index: 3, kind: input, shape index: {}]   ;;  %s1338_s4 = inlined_call_operand.vmem [shape: f32[1,32], index: 4, kind: input, shape index: {}]   ;;  %s1339_s5 = inlined_call_operand.vmem [shape: f32[32,1], index: 5, kind: input, shape index: {}]   ;;  %s1340_s6 = inlined_call_operand.<no memory space> [shape: f32[1,1], index: 6, kind: input, shape index: {}]   ;;  %s1341_s7 = inlined_call_operand.vmem [shape: f32[2,23,1], index: 7, kind: output, shape index: {}]  }
   0x1   :  { %12 = sst [smem:[#allocation2]] %s1340_s6 }
   0x2   :  { %13 = vsyncpa [#allocation4], 0 }
   0x3   :  { %15 = vsyncpa [#allocation4 + $0x1], 0 }
   0x4   :  { %16 = vsyncpa [#allocation6], 0  ;;  %s1116_s26 = smov 0   ;;  %s1118_s27 = smov 0  }
   0x5   :  { %s1120_s28 = smov 0   ;;  %s1122_s29 = smov 0  }
   0x6 LB: > { %s1135_s6 = sadd.s32 4294967295, %s1063_s29   ;;  %p68_p0 = scmp.ne.s32.totalorder %s1055_s27, %s1051_s26  ;;  %s1063_s29 = sphi %s1122_s29, %s1356_s29   ;;  %s1059_s28 = sphi %s1120_s28, %s1355_s28   ;;  %s1055_s27 = sphi %s1118_s27, %s1354_s27   ;;  %s1051_s26 = sphi %s1116_s26, %s1353_s26  }
   0x7   : > { %p1342_p1 = scmp.eq.s32.totalorder %s1135_s6, 0  ;;  %p757_p2 = scmp.ge.s32.totalorder %s1063_s29, 1 }
   0x8   : > { %p210_p3 = scmp.lt.s32.totalorder %s1063_s29, 3  ;;  %s1065_s9 = smov [#allocation5]  }
   0x9   : > { %p1143_p4 = por %p1342_p1, %p68_p0  ;;  %s222_s10 = sshll.u32 %s1065_s9, 4  ;;  %s223_s10 = int_to_ptr.vmem [resolvable:$true] %s222_s10 }
   0xa   : > { %p1147_p5 = pnand %p757_p2, %p210_p3  ;;  %s1066_s12 = smov [#allocation7]  }
   0xb   : > { %s1345_s30 = scalar_select %p1143_p4, 1, 0 }
   0xc   : > { %s1346_s8 = scalar_select %p1147_p5, 1, 0 }
   0xd   : > { %p878_p6 = pneg %p1147_p5  ;;  %s235_s13 = sshll.u32 %s1066_s12, 4  ;;  %s1159_s13 = int_to_ptr.vmem [resolvable:$true] %s235_s13 }
   0xe   : > { %s939_s16 = scalar_lea.hbm %s1336_s2, 512 }
   0xf   : > { %p1155_p7 = pnand %p878_p6, %p1342_p1  ;;  %p940_p8 = scmp.ne.s32.totalorder %s1336_s2, %s939_s16 }
  0x10   : > { %p946_p12 = scmp.lt.u32.totalorder %s939_s16, %s1336_s2 }
  0x11   : > { %p941_p9 = pneg %p1155_p7 }
  0x13   : > { %p942_p10 = pnand %p941_p9, %p940_p8 }
  0x15   : > { %p943_p11 = pneg %p942_p10 }
  0x17   : > { %p948_p13 = pnand %p946_p12, %p943_p11 }
  0x19   : > { %951 = shalt.err (!%p948_p13)
}
  0x1a   : > { %s952_s21 = scalar_lea.vmem %s223_s10, 512  ;;  %p960_p6 = scmp.lt.s32.totalorder %s223_s10, %s223_s10 }
  0x1b   : > { %p953_p0 = scmp.ne.s32.totalorder %s223_s10, %s952_s21  ;;  %p961_p1 = scmp.lt.s32.totalorder %s952_s21, %s952_s21 }
  0x1d   : > { %p955_p2 = pnand %p953_p0, %p941_p9  ;;  %p962_p4 = por %p961_p1, %p960_p6 }
  0x1f   : > { %p956_p3 = pneg %p955_p2 }
  0x21   : > { %p963_p5 = pnand %p962_p4, %p956_p3 }
  0x23   : > { %966 = shalt.err (!%p963_p5)
}
  0x24   : > { %s1067_s22 = smov 128   ;;  %s1068_s23 = smov 8  }
  0x25   : > { %881 = dma.hbm_to_vmem [thread:$0]  (!%p1155_p7), %s1336_s2, 512, %s223_s10, [#allocation6], %s1067_s22, %s1067_s22, %s1068_s23  }
  0x26   : > { %s967_s12 = scalar_lea.hbm %s1337_s3, 512 }
  0x27   : > { %p968_p8 = scmp.ne.s32.totalorder %s1337_s3, %s967_s12  ;;  %p974_p5 = scmp.lt.u32.totalorder %s967_s12, %s1337_s3 }
  0x29   : > { %p970_p1 = pnand %p968_p8, %p941_p9 }
  0x2b   : > { %p971_p4 = pneg %p970_p1 }
  0x2d   : > { %p976_p10 = pnand %p974_p5, %p971_p4 }
  0x2f   : > { %979 = shalt.err (!%p976_p10)
}
  0x30   : > { %s980_s10 = scalar_lea.vmem %s1159_s13, 512  ;;  %p988_p0 = scmp.lt.s32.totalorder %s1159_s13, %s1159_s13 }
  0x31   : > { %p981_p11 = scmp.ne.s32.totalorder %s1159_s13, %s980_s10  ;;  %p989_p2 = scmp.lt.s32.totalorder %s980_s10, %s980_s10 }
  0x33   : > { %p983_p12 = pnand %p981_p11, %p941_p9  ;;  %p990_p3 = por %p989_p2, %p988_p0 }
  0x35   : > { %p984_p13 = pneg %p983_p12 }
  0x37   : > { %p991_p6 = pnand %p990_p3, %p984_p13 }
  0x39   : > { %994 = shalt.err (!%p991_p6)
}
  0x3a   : > { %884 = dma.hbm_to_vmem [thread:$0]  (!%p1155_p7), %s1337_s3, 512, %s1159_s13, [#allocation6], %s1067_s22, %s1067_s22, %s1068_s23  }
  0x3b   : > { %s1209_s20 = sadd.s32 1, %s1063_s29   ;;  %s55_s21 = sadd.s32 1, %s1059_s28 }
  0x3c   : > { %s52_s11 = ssub.s32 %s1063_s29, %s1209_s20  ;;  %p62_p9 = scmp.ne.s32.totalorder %s1059_s28, %s1055_s27 }
  0x3d   : > { %p53_p8 = scmp.eq.s32.totalorder %s52_s11, 0  ;;  %p63_p1 = scmp.eq.s32.totalorder %s1063_s29, 0 }
  0x3e   : > { %p891_p4 = scmp.lt.s32.totalorder %s1063_s29, 2  ;;  %s266_s24 = sand.u32 1, %s1059_s28  }
  0x3f   : > { %s1220_s25 = scalar_select %p53_p8, %s1059_s28, %s55_s21  }
  0x40   : > { %p64_p5 = por %p63_p1, %p62_p9  ;;  %s761_s26 = sshll.u32 %s266_s24, 3 }
  0x41   : > { %s762_s9 = sshll.u32 %s1063_s29, 7  ;;  %s270_s13 = scalar_lea.vmem [#allocation3], %s761_s26 }
  0x42   : > { %s1226_s15 = scalar_lea.hbm %s1335_s1, %s762_s9  ;;  %s277_s22 = sshll.u32 %s270_s13, 4  ;;  %s1232_s22 = int_to_ptr.vmem [resolvable:$true] %s277_s22 }
  0x43   : > { %p1228_p7 = pnand %p891_p4, %p64_p5  ;;  %s267_s29 = scalar_lea.sflag [#allocation4], %s266_s24 }
  0x44   : > { %s995_s16 = scalar_lea.hbm %s1226_s15, 128  ;;  %s1000_s18 = scalar_lea.hbm %s1335_s1, 256 }
  0x45   : > { %p996_p10 = scmp.ne.s32.totalorder %s1226_s15, %s995_s16  ;;  %p997_p11 = pneg %p1228_p7 }
  0x46   : > { %p1001_p0 = scmp.lt.u32.totalorder %s1226_s15, %s1335_s1  ;;  %p1002_p2 = scmp.lt.u32.totalorder %s1000_s18, %s995_s16 }
  0x47   : > { %p998_p12 = pnand %p997_p11, %p996_p10  ;;  %p1004_p6 = scmp.lt.u32.totalorder %s995_s16, %s1226_s15 }
  0x48   : > { %p1003_p3 = por %p1002_p2, %p1001_p0 }
  0x49   : > { %p999_p13 = pneg %p998_p12 }
  0x4a   : > { %p1005_p9 = por %p1004_p6, %p1003_p3 }
  0x4c   : > { %p1006_p8 = pnand %p1005_p9, %p999_p13 }
  0x4e   : > { %1009 = shalt.err (!%p1006_p8)
}
  0x4f   : > { %s1010_s11 = scalar_lea.vmem %s1232_s22, 128  ;;  %s1069_s24 = smov [#allocation3]  }
  0x50   : > { %p1011_p1 = scmp.ne.s32.totalorder %s1232_s22, %s1010_s11  ;;  %s1015_s26 = sshll.u32 %s1069_s24, 4  ;;  %s1016_s26 = int_to_ptr.vmem [resolvable:$false] %s1015_s26 }
  0x51   : > { %s1017_s9 = scalar_lea.vmem %s1016_s26, 256  ;;  %p1018_p10 = scmp.lt.s32.totalorder %s1232_s22, %s1016_s26 }
  0x52   : > { %p1013_p4 = pnand %p1011_p1, %p997_p11  ;;  %p1019_p12 = scmp.lt.s32.totalorder %s1017_s9, %s1010_s11 }
  0x54   : > { %p1014_p5 = pneg %p1013_p4  ;;  %p1020_p0 = por %p1019_p12, %p1018_p10 }
  0x56   : > { %p1021_p2 = pnand %p1020_p0, %p1014_p5 }
  0x58   : > { %1024 = shalt.err (!%p1021_p2)
}
  0x59   : > { %888 = dma.hbm_to_vmem [thread:$0]  (!%p1228_p7), %s1226_s15, 128, %s1232_s22, %s267_s29  }
  0x5a   : > { %p1349_p13 = scmp.ne.s32.totalorder %s1346_s8, 0 }
  0x5b   : > { %s288_s12 = sand.u32 (!%p1349_p13), 1, %s1055_s27   ;;  %p1350_p11 = scmp.ne.s32.totalorder (!%p1349_p13), %s1345_s30, 0 }
  0x5c   : > { %286 = sbr.rel (%p1349_p13) target bundleno = 714 (0x2ca), region = 48  ;;  %s764_s14 = sshll.u32 (!%p1349_p13), %s288_s12, 3 }
  0x5d   : > { %s289_s13 = scalar_lea.sflag (!%p1349_p13), [#allocation4], %s288_s12  ;;  %s292_s16 = scalar_lea.vmem (!%p1349_p13), [#allocation3], %s764_s14 }
  0x63   : > { %1042 = dma.done.wait (%p1350_p11), %s289_s13, 128  }
  0x64   : > { %1044 = vsyncadd (%p1350_p11), %s289_s13, 4294967168  ;;  %p1351_p3 = scmp.eq.s32.totalorder %s1135_s6, 0 }
  0x66   : > { %1046 = dma.done.wait (%p1351_p3), [#allocation6], 1024   ;;  %p1352_p6 = pmov %p1351_p3 }
  0x67   : > { %p336_p7 = scmp.lt.s32.totalorder %s1135_s6, 1  ;;  %vm352_vm0 = vcmask 261120   ;;  %v348_v2 = vld [vmem:[%s292_s16] sm:$0xff]  ;;  %v449_v9 = vld [vmem:[#allocation5] sm:$0xff]  ;;  %v450_v10 = vld [vmem:[#allocation5 + $0x8] sm:$0xff]  ;;  %v1070_v15 = vmov 0.0|0.0   ;;  %v453_v42 = vlaneseq }
  0x68   : > { %1048 = vsyncadd (%p1352_p6), [#allocation6], 4294966272  ;;  %v351_v5 = vmul.f32 %v348_v2, %v348_v2  ;;  %v852_v11 = vpack.c.bf16 %v450_v10, %v449_v9  ;;  %v451_v12 = vld [vmem:[#allocation5 + $0x10] sm:$0xff]  ;;  %v452_v13 = vld [vmem:[#allocation5 + $0x18] sm:$0xff]  ;;  %851 = vmatprep.subr.bf16.mxu1 %v1070_v15  ;;  %845 = vmatprep.subr.bf16.mxu0 %v1070_v15  ;;  %vm1071_vm1 = vmmov 0   ;;  %v1072_v19 = vmov 0.0  }
  0x69   : > { %s1358_s6 = smov (!%p336_p7, %s1135_s6), 1  ;;  %v371_v14 = vld [vmem:[#allocation7] sm:$0xff]  ;;  %v372_v16 = vld [vmem:[#allocation7 + $0x8] sm:$0xff]  ;;  %v855_v17 = vpack.c.bf16 %v452_v13, %v451_v12  ;;  %819 = vmatprep.mubr.msk.f32.mxu1 %vm1071_vm1, %v1072_v19  ;;  %808 = vmatprep.mubr.msk.f32.mxu0 %vm1071_vm1, %v1072_v19  ;;  %v373_v20 = vld [vmem:[#allocation7 + $0x10] sm:$0xff]  ;;  %v454_v43 = vshrl.u32 %v453_v42, 7  ;;  %s562_s9 = sld [smem:[#allocation2]] }
  0x6a   : > { %s780_s8 = sshll.u32 %s1358_s6, 4  ;;  %v359_v7 = vsel %vm352_vm0, %v351_v5, 0.0  ;;  %853 = vmatpush3.bf16.msra.mxu1 %v852_v11  ;;  %v846_v18 = vpack.c.bf16 %v372_v16, %v371_v14  ;;  %v374_v21 = vld [vmem:[#allocation7 + $0x18] sm:$0xff]  ;;  %v558_v36 = vld [vmem:[%s1339_s5] sm:$0xff]  ;;  %v560_v39 = vld [vmem:[%s1339_s5 + $0x10] sm:$0xff]  ;;  %s867_s12 = smul.u32 24, %s1358_s6 }
  0x6b   : > { %s340_s23 = scalar_lea.vmem %s1334_s0, %s780_s8  ;;  %360 = vadd.xlane.f32.xlu1 %v359_v7  ;;  %854 = vmatprep.subr.bf16.mxu1 %v1070_v15  ;;  %v849_v22 = vpack.c.bf16 %v374_v21, %v373_v20  ;;  %v559_v37 = vld [vmem:[%s1339_s5 + $0x8] sm:$0xff]  ;;  %v561_v40 = vld [vmem:[%s1339_s5 + $0x18] sm:$0xff]  ;;  %v455_v46 = vsub.s32 0, %v454_v43  ;;  %v774_v53 = vld [vmem:[%s1338_s4] ss:$0 sm:$0xff]  ;;  %vm653_vm2 = vcmask 7168  }
  0x6c   : > { %v346_v0 = vld [vmem:[%s340_s23] sm:$0xff]  ;;  %v347_v1 = vld [vmem:[%s340_s23 + $0x8] sm:$0xff]  ;;  %847 = vmatpush3.bf16.msra.mxu0 %v846_v18  ;;  %v858_v38 = vpack.c.bf16 %v559_v37, %v558_v36  ;;  %v861_v41 = vpack.c.bf16 %v561_v40, %v560_v39  ;;  %s345_s16 = scalar_lea.vmem %s1341_s7, %s867_s12  ;;  %vm655_vm3 = vcmask 6144  }
  0x6d   : > { %v349_v3 = vmul.f32 %v346_v0, %v346_v0  ;;  %v350_v4 = vmul.f32 %v347_v1, %v347_v1  ;;  %848 = vmatprep.subr.bf16.mxu0 %v1070_v15 }
  0x6e   : > { %856 = vmatpush3.bf16.msra.mxu1 %v855_v17 }
  0x6f   : > { %v353_v6 = vsel %vm352_vm0, %v349_v3, 0.0  ;;  %v356_v8 = vsel %vm352_vm0, %v350_v4, 0.0  ;;  %863 = vmatprep.subr.bf16.mxu1 %v1070_v15 }
  0x70   : > { %354 = vadd.xlane.f32.xlu0 %v353_v6  ;;  %850 = vmatpush3.bf16.msra.mxu0 %v849_v22 }
  0x71   : > { %857 = vmatprep.subr.bf16.mxu0 %v1070_v15 }
  0x74   : > { %357 = vadd.xlane.f32.xlu0 %v356_v8 }
  0xf8   : > { %v361_v24 = vpop.xlane.xlu1 %360 }
  0xf9   : > { %v364_v26 = vmax.f32 %v361_v24, 1e-24 }
  0xfd   : > { %v355_v23 = vpop.xlane.xlu0 %354 }
  0xfe   : > { %v362_v25 = vmax.f32 %v355_v23, 1e-24 }
 0x100   : > { %933 = vrsqrt.f32 %v362_v25 }
 0x101   : > { %v358_v27 = vpop.xlane.xlu0 %357  ;;  %935 = vrsqrt.f32 %v364_v26 }
 0x102   : > { %v363_v28 = vmax.f32 %v358_v27, 1e-24 }
 0x104   : > { %937 = vrsqrt.f32 %v363_v28 }
 0x10a   : > { %v934_v29 = vpop.eup %933 }
 0x10b   : > { %v368_v30 = vmul.f32 %v934_v29, %v346_v0  ;;  %v936_v31 = vpop.eup %935  ;;  %v563_v0 = vstv %s562_s9 }
 0x10c   : > { %v370_v35 = vmul.f32 %v936_v31, %v348_v2 }
 0x10d   : > { %820 = vmatmul.mubr.msk.f32.vlgmr.msra.gmra.mrb[0].mxu1 %vm352_vm0, %v368_v30 }
 0x10e   : > { %v938_v32 = vpop.eup %937  ;;  %822 = vmatprep.mubr.msk.f32.mxu1 %vm1071_vm1, %v1072_v19  ;;  %865 = vmatpush3.bf16.msra.mxu1 %v858_v38 }
 0x10f   : > { %v369_v33 = vmul.f32 %v938_v32, %v347_v1  ;;  %864 = vmatprep.subr.bf16.mxu1 %v1070_v15 }
 0x111   : > { %823 = vmatmul.mubr.msk.f32.gmra.mrb[2].mxu1 %vm352_vm0, %v369_v33  ;;  %v376_v34 = vrot.slane %v369_v33, 7 }
 0x112   : > { %825 = vmatprep.mubr.msk.f32.mxu1 %vm1071_vm1, %v1072_v19  ;;  %866 = vmatpush3.bf16.msra.mxu1 %v861_v41 }
 0x113   : > { %809 = vmatmul.mubr.msk.f32.vlgmr.msra.gmra.mrb[0].mxu0 %vm352_vm0, %v376_v34 }
 0x114   : > { %836 = vmatprep.mubr.msk.f32.mxu0 %vm1071_vm1, %v1072_v19  ;;  %859 = vmatpush3.bf16.msra.mxu0 %v858_v38 }
 0x115   : > { %826 = vmatmul.mubr.msk.f32.gmra.mrb[4].mxu1 %vm352_vm0, %v370_v35  ;;  %860 = vmatprep.subr.bf16.mxu0 %v1070_v15 }
 0x116   : > { %842 = vmatprep.mubr.msk.f32.mxu1 %vm1071_vm1, %v1072_v19 }
 0x118   : > { %862 = vmatpush3.bf16.msra.mxu0 %v861_v41 }
 0x1e0   : > { %v531_v44 = vpop.f32.mrb[0].mxu1 }
 0x1e1   : > { %v821_v45 = vpop.f32.mrb[1].mxu1 }
 0x1e4   : > { %v536_v47 = vpop.f32.mrb[2].mxu1 }
 0x1e5   : > { %v824_v48 = vpop.f32.mrb[3].mxu1 }
 0x1e6   : > { %v445_v49 = vpop.f32.mrb[0].mxu0 }
 0x1e7   : > { %v456_v50 = vrot.slane %v445_v49, %v455_v46  ;;  %v810_v51 = vpop.f32.mrb[1].mxu0 }
 0x1e8   : > { %v541_v52 = vpop.f32.mrb[4].mxu1 }
 0x1e9   : > { %v532_v54 = vadd.f32 %v531_v44, %v456_v50  ;;  %v537_v55 = vadd.f32 %v536_v47, %v456_v50  ;;  %v542_v56 = vadd.f32 %v541_v52, %v456_v50  ;;  %v827_v57 = vpop.f32.mrb[5].mxu1 }
 0x1eb   : > { %v552_v58 = vadd.f32 %v774_v53, %v532_v54  ;;  %v554_v59 = vadd.f32 %v774_v53, %v542_v56  ;;  %v553_v60 = vadd.f32 %v774_v53, %v537_v55 }
 0x1ed   : > { %v555_v61 = vmax.f32 %v552_v58, 0.0  ;;  %v557_v62 = vmax.f32 %v554_v59, 0.0  ;;  %v556_v63 = vmax.f32 %v553_v60, 0.0 }
 0x1ef   : > { %837 = vmatmul.mubr.msk.f32.vlgmr.msra.gmra.mrb[2].mxu0 %vm352_vm0, %v555_v61  ;;  %843 = vmatmul.mubr.msk.f32.vlgmr.msra.gmra.mrb[6].mxu1 %vm352_vm0, %v557_v62 }
 0x1f0   : > { %839 = vmatprep.mubr.msk.f32.mxu0 %vm1071_vm1, %v1072_v19 }
 0x1f3   : > { %840 = vmatmul.mubr.msk.f32.gmra.mrb[4].mxu0 %vm352_vm0, %v556_v63 }
 0x2c2   : > { %v639_v1 = vpop.f32.mrb[2].mxu0  ;;  %v649_v2 = vpop.f32.mrb[6].mxu1 }
 0x2c3   : > { %v640_v3 = vadd.f32 %v639_v1, %v563_v0  ;;  %v650_v4 = vadd.f32 %v649_v2, %v563_v0  ;;  %v838_v5 = vpop.f32.mrb[3].mxu0  ;;  %v844_v6 = vpop.f32.mrb[7].mxu1 }
 0x2c5   : > { %654 = vst.msk [vmem:[%s345_s16] sm:$0xff] %vm653_vm2, %v640_v3  ;;  %657 = vst.msk [vmem:[%s345_s16 + $0xf] sm:$0xff] %vm653_vm2, %v650_v4 }
 0x2c6   : > { %v644_v7 = vpop.f32.mrb[4].mxu0 }
 0x2c7   : > { %v645_v8 = vadd.f32 %v644_v7, %v563_v0  ;;  %v841_v9 = vpop.f32.mrb[5].mxu0 }
 0x2c9   : > { %656 = vst.msk [vmem:[%s345_s16 + $0x8] sm:$0x7f] %vm655_vm3, %v645_v8 }
 0x2ca PF: > { %p19_p9 = scmp.ge.s32.totalorder %s1209_s20, 4   ;;  %s1353_s26 = smov %s1055_s27 }
 0x2cb   : > { %s1354_s27 = smov %s1059_s28  ;;  %s1355_s28 = smov %s1220_s25 }
 0x2cc   : > { %s1356_s29 = smov %s1209_s20  ;;  %21 = sbr.rel (!%p19_p9) target bundleno = 6 (0x6), region = 99 }
 0x2d3   :  { %679 = vsyncpa [#allocation4], 1 }
 0x2d4   :  { %681 = vsyncpa [#allocation4 + $0x1], 1 }
 0x2d5   :  { %682 = vsyncpa [#allocation6], 1 }

</bundles_post_ra>
